<compile_context>
chip_gen: v6e
topology: v6e:2x2x1
jax: 0.10.0
libtpu: 0.0.40
codegen_flags: <defaults>
</compile_context>

<pallas_src>
import jax
import jax.numpy as jnp
import numpy as np
from jax.experimental import pallas as pl
from jax.experimental.pallas import tpu as pltpu


def _fused_kernel(x_ref, w1t_ref, b1_ref, w2t_ref, b2_ref, o_ref):
    # x_ref / o_ref: (C, tile_n)  — channels on sublanes, points on lanes.
    x = x_ref[...].astype(jnp.float32)
    # net1: conv1(k=1) + folded BN1 + ReLU
    h = jnp.dot(w1t_ref[...], x, preferred_element_type=jnp.float32) + b1_ref[...]
    h = jnp.maximum(h, 0.0)
    # net2: conv2(k=1) + folded BN2
    y = jnp.dot(w2t_ref[...], h, preferred_element_type=jnp.float32) + b2_ref[...]
    # residual + final ReLU (all in f32, cast once at the store)
    o_ref[...] = jnp.maximum(y + x, 0.0).astype(o_ref.dtype)


def conv_bn_relu_res1d_pallas(x_ncw, w1t, b1, w2t, b2, *, tile_n=1024):
    """x_ncw: (B, C, N).  w1t: (H, C), b1: (H,), w2t: (C, H), b2: (C,)."""
    B, C, N = x_ncw.shape
    H = w1t.shape[0]

    # Points (N) live on the lane axis: tile must be a multiple of 128 or the
    # full extent.  Ragged tails are handled by Pallas block clamping/masking
    # (columns are independent, so padded lanes never contaminate valid ones).
    if N <= tile_n:
        tile_n = N
    else:
        assert tile_n % 128 == 0, "tile_n must be a multiple of 128"
    n_tiles = pl.cdiv(N, tile_n)

    itemsize = jnp.dtype(x_ncw.dtype).itemsize
    tile_bytes = C * tile_n * itemsize
    weight_bytes = (H * C + C * H + H + C) * 4
    # Double-buffered in + out tiles, resident weights, generous headroom.
    vmem_limit = min(64 * 1024 * 1024,
                     max(8 * 1024 * 1024, 6 * tile_bytes + weight_bytes + 2 * 1024 * 1024))

    flops = 4 * B * N * C * H  # two (C,H) matmuls per point
    bytes_accessed = 2 * B * C * N * itemsize + weight_bytes
    cost = pl.CostEstimate(flops=flops, transcendentals=0,
                           bytes_accessed=bytes_accessed)

    out = pl.pallas_call(
        _fused_kernel,
        out_shape=jax.ShapeDtypeStruct((B, C, N), x_ncw.dtype),
        grid_spec=pltpu.PrefetchScalarGridSpec(
            num_scalar_prefetch=0,
            grid=(B, n_tiles),
            in_specs=[
                # x block: (1, C, tile_n), batch dim squeezed -> kernel sees (C, tile_n)
                pl.BlockSpec((None, C, tile_n), lambda b, j: (b, 0, j)),
                pl.BlockSpec((H, C), lambda b, j: (0, 0)),   # W1_T (resident)
                pl.BlockSpec((H, 1), lambda b, j: (0, 0)),   # b1   (resident)
                pl.BlockSpec((C, H), lambda b, j: (0, 0)),   # W2_T (resident)
                pl.BlockSpec((C, 1), lambda b, j: (0, 0)),   # b2   (resident)
            ],
            out_specs=pl.BlockSpec((None, C, tile_n), lambda b, j: (b, 0, j)),
        ),
        compiler_params=pltpu.CompilerParams(
            dimension_semantics=("parallel", "parallel"),
            vmem_limit_bytes=vmem_limit),
        cost_estimate=cost,
    )(x_ncw, w1t, b1.reshape(H, 1), w2t, b2.reshape(C, 1))

    return out


def fold_bn_into_conv(w_t, b, gamma, beta, mean, var, eps=1e-5):
    """Fold inference-mode BatchNorm1d into a k=1 Conv1d.

    w_t: (C_out, C_in) so that conv(x) == w_t @ x + b[:, None].
    Returns (w_eff, b_eff) such that BN(conv(x)) == w_eff @ x + b_eff[:, None].
    """
    scale = gamma / jnp.sqrt(var + eps)          # (C_out,)
    w_eff = w_t * scale[:, None]
    b_eff = (b - mean) * scale + beta
    return w_eff, b_eff


def reference_jax(x_ncw, w1t, b1, w2t, b2):
    x = x_ncw.astype(jnp.float32)
    h = jnp.maximum(jnp.einsum('hc,bcn->bhn', w1t, x) + b1[None, :, None], 0.0)
    y = jnp.einsum('ch,bhn->bcn', w2t, h) + b2[None, :, None]
    return jnp.maximum(y + x, 0.0)


if __name__ == "__main__":
    # Module config (defaults of ConvBNReLURes1D)
    channel = 32
    res_expansion = 1.0
    hidden = int(channel * res_expansion)
    B, N = 2, 1024           # x: (B, channel, N)

    key = jax.random.PRNGKey(0)
    keys = jax.random.split(key, 8)

    x = jax.random.normal(keys[0], (B, channel, N), dtype=jnp.float32)

    # Conv1d weights: torch shape (out, in, 1) -> (out, in) for W_T @ x form
    w1 = 0.1 * jax.random.normal(keys[1], (hidden, channel), dtype=jnp.float32)
    b1 = 0.1 * jax.random.normal(keys[2], (hidden,), dtype=jnp.float32)
    w2 = 0.1 * jax.random.normal(keys[3], (channel, hidden), dtype=jnp.float32)
    b2 = 0.1 * jax.random.normal(keys[4], (channel,), dtype=jnp.float32)

    # BatchNorm1d params (inference mode), deterministic but non-trivial
    g1 = 1.0 + 0.05 * jax.random.normal(keys[5], (hidden,), dtype=jnp.float32)
    be1 = 0.05 * jax.random.normal(keys[6], (hidden,), dtype=jnp.float32)
    m1 = jnp.zeros((hidden,), jnp.float32)
    v1 = jnp.ones((hidden,), jnp.float32)

    g2 = 1.0 + 0.05 * jax.random.normal(keys[7], (channel,), dtype=jnp.float32)
    be2 = jnp.zeros((channel,), jnp.float32)
    m2 = jnp.zeros((channel,), jnp.float32)
    v2 = jnp.ones((channel,), jnp.float32)

    w1f, b1f = fold_bn_into_conv(w1, b1, g1, be1, m1, v1)
    w2f, b2f = fold_bn_into_conv(w2, b2, g2, be2, m2, v2)

    out = conv_bn_relu_res1d_pallas(x, w1f, b1f, w2f, b2f, tile_n=256)
    out = jax.block_until_ready(out)

    ref = reference_jax(x, w1f, b1f, w2f, b2f)
    np.testing.assert_allclose(np.asarray(out), np.asarray(ref),
                               rtol=1e-5, atol=1e-5)
    print("KERNEL_OK")
</pallas_src>

<mosaic_0001>
module attributes {stable_mosaic.version = 11 : i64} {
  func.func @_fused_kernel(%arg0: i32, %arg1: i32, %arg2: memref<1x32x256xf32, #tpu.memory_space<vmem>>, %arg3: memref<32x32xf32, #tpu.memory_space<vmem>>, %arg4: memref<32x1xf32, #tpu.memory_space<vmem>>, %arg5: memref<32x32xf32, #tpu.memory_space<vmem>>, %arg6: memref<32x1xf32, #tpu.memory_space<vmem>>, %arg7: memref<1x32x256xf32, #tpu.memory_space<vmem>>) attributes {dimension_semantics = [#tpu.dimension_semantics<parallel>, #tpu.dimension_semantics<parallel>], iteration_bounds = array<i64: 2, 4>, scalar_prefetch = 0 : i64, scratch_operands = 0 : i64, tpu.core_type = #tpu.core_type<tc>, window_params = [{transform_indices = @transform_0, window_bounds = array<i64: 1, 32, 256>}, {pipeline_mode = #tpu.pipeline_mode<synchronous>, transform_indices = @transform_1, window_bounds = array<i64: 32, 32>}, {pipeline_mode = #tpu.pipeline_mode<synchronous>, transform_indices = @transform_2, window_bounds = array<i64: 32, 1>}, {pipeline_mode = #tpu.pipeline_mode<synchronous>, transform_indices = @transform_3, window_bounds = array<i64: 32, 32>}, {pipeline_mode = #tpu.pipeline_mode<synchronous>, transform_indices = @transform_4, window_bounds = array<i64: 32, 1>}, {transform_indices = @transform_5, window_bounds = array<i64: 1, 32, 256>}]} {
    %c0 = arith.constant 0 : index
    %c0_0 = arith.constant 0 : index
    %c0_1 = arith.constant 0 : index
    %0 = vector.load %arg2[%c0, %c0_0, %c0_1] : memref<1x32x256xf32, #tpu.memory_space<vmem>>, vector<1x32x256xf32>
    %1 = vector.shape_cast %0 : vector<1x32x256xf32> to vector<32x256xf32>
    %c0_2 = arith.constant 0 : index
    %c0_3 = arith.constant 0 : index
    %2 = vector.load %arg3[%c0_2, %c0_3] : memref<32x32xf32, #tpu.memory_space<vmem>>, vector<32x32xf32>
    %cst = arith.constant dense<0.000000e+00> : vector<32x256xf32>
    %3 = tpu.matmul %2, %1, %cst {dimension_numbers = #tpu.dot_dimension_numbers<[1], [0], [0], [1], [0, 0, 1, 1], [], []>} : vector<32x32xf32>, vector<32x256xf32>, vector<32x256xf32> -> vector<32x256xf32>
    %c0_4 = arith.constant 0 : index
    %c0_5 = arith.constant 0 : index
    %4 = vector.load %arg4[%c0_4, %c0_5] : memref<32x1xf32, #tpu.memory_space<vmem>>, vector<32x1xf32>
    %5 = vector.broadcast %4 : vector<32x1xf32> to vector<32x256xf32>
    %6 = arith.addf %3, %5 : vector<32x256xf32>
    %cst_6 = arith.constant 0.000000e+00 : f32
    %7 = vector.broadcast %cst_6 : f32 to vector<32x256xf32>
    %8 = arith.maximumf %6, %7 : vector<32x256xf32>
    %c0_7 = arith.constant 0 : index
    %c0_8 = arith.constant 0 : index
    %9 = vector.load %arg5[%c0_7, %c0_8] : memref<32x32xf32, #tpu.memory_space<vmem>>, vector<32x32xf32>
    %cst_9 = arith.constant dense<0.000000e+00> : vector<32x256xf32>
    %10 = tpu.matmul %9, %8, %cst_9 {dimension_numbers = #tpu.dot_dimension_numbers<[1], [0], [0], [1], [0, 0, 1, 1], [], []>} : vector<32x32xf32>, vector<32x256xf32>, vector<32x256xf32> -> vector<32x256xf32>
    %c0_10 = arith.constant 0 : index
    %c0_11 = arith.constant 0 : index
    %11 = vector.load %arg6[%c0_10, %c0_11] : memref<32x1xf32, #tpu.memory_space<vmem>>, vector<32x1xf32>
    %12 = vector.broadcast %11 : vector<32x1xf32> to vector<32x256xf32>
    %13 = arith.addf %10, %12 : vector<32x256xf32>
    %14 = arith.addf %13, %1 : vector<32x256xf32>
    %cst_12 = arith.constant 0.000000e+00 : f32
    %15 = vector.broadcast %cst_12 : f32 to vector<32x256xf32>
    %16 = arith.maximumf %14, %15 : vector<32x256xf32>
    %c0_13 = arith.constant 0 : index
    %c0_14 = arith.constant 0 : index
    %c0_15 = arith.constant 0 : index
    %17 = vector.load %arg7[%c0_13, %c0_14, %c0_15] : memref<1x32x256xf32, #tpu.memory_space<vmem>>, vector<1x32x256xf32>
    %18 = vector.shape_cast %17 : vector<1x32x256xf32> to vector<32x256xf32>
    %19 = vector.shape_cast %16 : vector<32x256xf32> to vector<1x32x256xf32>
    tpu.vector_store %arg7[%c0_13, %c0_14, %c0_15], %19 {strides = array<i32>} : memref<1x32x256xf32, #tpu.memory_space<vmem>>, vector<1x32x256xf32>,
    return
  }
  func.func @transform_0(%arg0: i32, %arg1: i32) -> (i32, i32, i32) {
    %c0_i32 = arith.constant 0 : i32
    %c0_i32_0 = arith.constant 0 : i32
    return %arg0, %c0_i32, %arg1 : i32, i32, i32
  }
  func.func @transform_1(%arg0: i32, %arg1: i32) -> (i32, i32) {
    %c0_i32 = arith.constant 0 : i32
    %c0_i32_0 = arith.constant 0 : i32
    %c0_i32_1 = arith.constant 0 : i32
    return %c0_i32, %c0_i32_0 : i32, i32
  }
  func.func @transform_2(%arg0: i32, %arg1: i32) -> (i32, i32) {
    %c0_i32 = arith.constant 0 : i32
    %c0_i32_0 = arith.constant 0 : i32
    %c0_i32_1 = arith.constant 0 : i32
    return %c0_i32, %c0_i32_0 : i32, i32
  }
  func.func @transform_3(%arg0: i32, %arg1: i32) -> (i32, i32) {
    %c0_i32 = arith.constant 0 : i32
    %c0_i32_0 = arith.constant 0 : i32
    %c0_i32_1 = arith.constant 0 : i32
    return %c0_i32, %c0_i32_0 : i32, i32
  }
  func.func @transform_4(%arg0: i32, %arg1: i32) -> (i32, i32) {
    %c0_i32 = arith.constant 0 : i32
    %c0_i32_0 = arith.constant 0 : i32
    %c0_i32_1 = arith.constant 0 : i32
    return %c0_i32, %c0_i32_0 : i32, i32
  }
  func.func @transform_5(%arg0: i32, %arg1: i32) -> (i32, i32, i32) {
    %c0_i32 = arith.constant 0 : i32
    %c0_i32_0 = arith.constant 0 : i32
    return %arg0, %c0_i32, %arg1 : i32, i32, i32
  }
}

</mosaic_0001>

<bundles_post_ra>
// kernel: tpu_custom_call.1
= control target key start
LH: loop header
LB: loop body
LE: loop exit
PB: predicated region body
PF: predicated region fallthrough
CT: control target
= control target key end

     0   :  { %10 = vsyncpa [#allocation3], 0  ;;  %s1226_s0 = inlined_call_operand.hbm [shape: f32[2,32,1024], index: 0, kind: input, shape index: {}]   ;;  %s1227_s1 = inlined_call_operand.vmem [shape: f32[32,32], index: 1, kind: input, shape index: {}]   ;;  %s1228_s2 = inlined_call_operand.vmem [shape: f32[32,1], index: 2, kind: input, shape index: {}]   ;;  %s1229_s3 = inlined_call_operand.vmem [shape: f32[32,32], index: 3, kind: input, shape index: {}]   ;;  %s1230_s4 = inlined_call_operand.vmem [shape: f32[32,1], index: 4, kind: input, shape index: {}]   ;;  %s1231_s5 = inlined_call_operand.hbm [shape: f32[2,32,1024], index: 5, kind: output, shape index: {}]  }
   0x1   :  { %12 = vsyncpa [#allocation3 + $0x1], 0 }
   0x2   :  { %13 = vsyncpa [#allocation4], 0 }
   0x3   :  { %15 = vsyncpa [#allocation4 + $0x1], 0  ;;  %s947_s18 = smov 0   ;;  %s949_s19 = smov 0  }
   0x4   :  { %s951_s20 = smov 0   ;;  %s953_s21 = smov 0  }
   0x5   :  { %s955_s22 = smov 0   ;;  %s957_s23 = smov 0  }
   0x6   :  { %s959_s24 = smov 0   ;;  %s961_s25 = smov 0  }
   0x7 LB: > { %1236 = sst [smem:[#allocation8_spill]] %s877_s18  ;;  %s668_s26 = sadd.s32 4294967295, %s905_s25   ;;  %s905_s25 = sphi %s961_s25, %s21_s25   ;;  %s901_s24 = sphi %s959_s24, %s1248_s24   ;;  %s897_s23 = sphi %s957_s23, %s1253_s23   ;;  %s893_s22 = sphi %s955_s22, %s1246_s22   ;;  %s889_s21 = sphi %s953_s21, %s1252_s21   ;;  %s885_s20 = sphi %s951_s20, %s1251_s20   ;;  %s881_s19 = sphi %s949_s19, %s1250_s19   ;;  %s877_s18 = sphi %s947_s18, %s1249_s18  }
   0x8   : > { %1237 = sst [smem:[#allocation9_spill]] %s901_s24  ;;  %s669_s27 = sadd.s32 4294967294, %s905_s25  }
   0x9   : > { %s30_s28 = sadd.s32 1, %s897_s23  ;;  %s33_s29 = sadd.s32 1, %s901_s24 }
   0xa   : > { %p31_p0 = scmp.ge.s32.totalorder %s30_s28, 4  ;;  %s42_s30 = sadd.s32 1, %s885_s20 }
   0xb   : > { %p49_p1 = scmp.ne.s32.totalorder %s885_s20, %s881_s19  ;;  %p50_p2 = scmp.eq.s32.totalorder %s905_s25, 0 }
   0xc   : > { %s1255_s28 = smov (%p31_p0, %s30_s28), 0  ;;  %s1257_s29 = smov (!%p31_p0, %s33_s29), %s901_s24 }
   0xd   : > { %1238 = sst [smem:[#allocation10_spill]] %s1255_s28  ;;  %s38_s6 = ssub.s32 %s897_s23, %s1255_s28 }
   0xe   : > { %p1000_p3 = por %p50_p2, %p49_p1  ;;  %p35_p4 = scmp.ge.s32.totalorder %s1257_s29, 2 }
   0xf   : > { %p55_p5 = scmp.ne.s32.totalorder %s881_s19, %s877_s18  ;;  %p56_p6 = scmp.eq.s32.totalorder %s668_s26, 0 }
  0x10   : > { %p165_p7 = scmp.eq.s32.totalorder %s668_s26, 7  ;;  %s1259_s29 = smov (%p35_p4, %s1257_s29), 0 }
  0x11   : > { %1240 = sst [smem:[#allocation11_spill]] %s1259_s29  ;;  %p1008_p8 = por %p56_p6, %p55_p5 }
  0x12   : > { %p1012_p9 = por %p165_p7, %p49_p1  ;;  %s37_s10 = ssub.s32 %s901_s24, %s1259_s29 }
  0x13   : > { %p171_p10 = scmp.eq.s32.totalorder %s669_s27, 7  ;;  %s39_s11 = sor.u32 %s38_s6, %s37_s10 }
  0x14   : > { %p40_p11 = scmp.eq.s32.totalorder %s39_s11, 0  ;;  %p705_p13 = scmp.lt.s32.totalorder %s905_s25, 8 }
  0x15   : > { %p1018_p12 = por %p171_p10, %p55_p5  ;;  %s203_s13 = sand.u32 1, %s885_s20  }
  0x16   : > { %s1025_s14 = scalar_select %p40_p11, %s885_s20, %s42_s30  }
  0x17   : > { %s672_s15 = sshll.u32 %s203_s13, 6  ;;  %s673_s16 = sshll.u32 %s897_s23, 1 }
  0x18   : > { %s674_s17 = sshll.u32 %s901_s24, 5  ;;  %s207_s26 = scalar_lea.vmem [#allocation2], %s672_s15 }
  0x19   : > { %s216_s28 = sshll.u32 %s207_s26, 4  ;;  %s213_s18 = sadd.s32 %s674_s17, %s673_s16  ;;  %s217_s28 = int_to_ptr.vmem [resolvable:$true] %s216_s28 }
  0x1a   : > { %s675_s29 = sshll.u32 %s213_s18, 7  ;;  %p1031_p0 = pnand %p705_p13, %p1000_p3 }
  0x1b   : > { %s215_s11 = scalar_lea.hbm %s1226_s0, %s675_s29  ;;  %p676_p1 = scmp.ge.s32.totalorder %s905_s25, 1 }
  0x1c   : > { %s204_s30 = scalar_lea.sflag [#allocation3], %s203_s13  ;;  %p783_p2 = pneg %p1031_p0 }
  0x1d   : > { %s794_s24 = scalar_lea.vmem %s217_s28, 1024  ;;  %s907_s15 = smov [#allocation2]  }
  0x1e   : > { %p795_p4 = scmp.ne.s32.totalorder %s217_s28, %s794_s24  ;;  %s799_s18 = sshll.u32 %s907_s15, 4  ;;  %s800_s18 = int_to_ptr.vmem [resolvable:$false] %s799_s18 }
  0x1f   : > { %s801_s7 = scalar_lea.vmem %s800_s18, 2048  ;;  %p802_p3 = scmp.lt.s32.totalorder %s217_s28, %s800_s18 }
  0x20   : > { %p797_p5 = pnand %p795_p4, %p783_p2  ;;  %p803_p7 = scmp.lt.s32.totalorder %s801_s7, %s794_s24 }
  0x22   : > { %p798_p6 = pneg %p797_p5  ;;  %p804_p10 = por %p803_p7, %p802_p3 }
  0x24   : > { %p805_p11 = pnand %p804_p10, %p798_p6 }
  0x26   : > { %808 = shalt.err (!%p805_p11)
}
  0x27   : > { %s908_s16 = smov 1024   ;;  %s909_s29 = smov 256  }
  0x28   : > { %s910_s13 = smov 16   ;;  %p224_p13 = scmp.lt.s32.totalorder %s905_s25, 9 }
  0x29   : > { %700 = dma.hbm_to_vmem [thread:$0]  (!%p1031_p0), %s215_s11, 1024, %s217_s28, %s204_s30, %s908_s16, %s909_s29, %s910_s13  }
  0x2a   : > { %p225_p2 = pnand %p676_p1, %p224_p13 }
  0x2b   : > { %s1047_s17 = sand.u32 (!%p225_p2), 1, %s881_s19  }
  0x2c   : > { %228 = sbr.rel (%p225_p2) target bundleno = 508 (0x1fc), region = 40  ;;  %s677_s24 = sshll.u32 (!%p225_p2), %s1047_s17, 6 }
  0x2d   : > { %s231_s26 = scalar_lea.sflag (!%p225_p2), [#allocation3], %s1047_s17  ;;  %s234_s6 = scalar_lea.vmem (!%p225_p2), [#allocation2], %s677_s24 }
  0x31   : > { %868 = dma.done.wait (%p1008_p8), %s231_s26, 1024  }
  0x32   : > { %870 = vsyncadd (%p1008_p8), %s231_s26, 4294966272  ;;  %v911_v0 = vmov 0.0   ;;  %v912_v1 = vmov 0   ;;  %v1059_v2 = vld [vmem:[%s234_s6 + $0x38] sm:$0xff]  ;;  %v1061_v3 = vld [vmem:[%s234_s6 + $0x30] sm:$0xff]  ;;  %vm299_vm0 = vcmask 261120  }
  0x33   : > { %376 = vmatprep.mubr.f32.mxu0 %v911_v0  ;;  %780 = vset.pattern.permute.xlu1 %v912_v1  ;;  %v1063_v4 = vld [vmem:[%s234_s6 + $0x28] sm:$0xff]  ;;  %v1066_v5 = vld [vmem:[%s234_s6 + $0x20] sm:$0xff]  ;;  %v1069_v6 = vld [vmem:[%s234_s6 + $0x18] sm:$0xff]  ;;  %s1149_s11 = scalar_lea.vmem [#allocation5], %s677_s24  ;;  %s688_s30 = sshll.u32 %s889_s21, 1 }
  0x34   : > { %779 = vset.pattern.permute.xlu0 %v912_v1  ;;  %513 = vmatprep.mubr.f32.mxu1 %v911_v0  ;;  %v1072_v7 = vld [vmem:[%s234_s6 + $0x10] sm:$0xff]  ;;  %v1075_v8 = vld [vmem:[%s234_s6 + $0x8] sm:$0xff]  ;;  %v278_v10 = vld [vmem:[%s1228_s2 + $0x18] sm:$0xff]  ;;  %s689_s24 = sshll.u32 %s893_s22, 5  ;;  %s578_s21 = sshll.u32 %s1149_s11, 4  ;;  %s1164_s21 = int_to_ptr.vmem [resolvable:$true] %s578_s21 }
  0x35   : > { %336 = vmatprep.subr.mxu0 %v1059_v2  ;;  %v276_v9 = vld [vmem:[%s1228_s2 + $0x8] sm:$0xff]  ;;  %v1084_v11 = vld [vmem:[%s234_s6] sm:$0xff]  ;;  %296 = vperm.xlu0 %779, %v278_v10   ;;  %v277_v14 = vld [vmem:[%s1228_s2 + $0x10] sm:$0xff]  ;;  %s575_s15 = sadd.s32 %s689_s24, %s688_s30  ;;  %s563_s29 = scalar_lea.sflag [#allocation4], %s1047_s17 }
  0x36   : > { %337 = vmatpush1.msra.mxu0 %v1061_v3  ;;  %286 = vperm.xlu1 %780, %v276_v9   ;;  %v271_v12 = vld [vmem:[%s1227_s1] sm:$0xff]  ;;  %v272_v15 = vld [vmem:[%s1227_s1 + $0x8] sm:$0xff]  ;;  %v273_v18 = vld [vmem:[%s1227_s1 + $0x10] sm:$0xff]  ;;  %s690_s22 = sshll.u32 %s575_s15, 7  ;;  %s809_s13 = scalar_lea.vmem %s1164_s21, 1024 }
  0x37   : > { %338 = vmatprep.subr.mxu0 %v1063_v4  ;;  %v275_v13 = vld [vmem:[%s1228_s2] sm:$0xff]  ;;  %v414_v16 = vld [vmem:[%s1230_s4 + $0x8] sm:$0xff]  ;;  %v416_v19 = vld [vmem:[%s1230_s4 + $0x18] sm:$0xff]  ;;  %s1171_s16 = scalar_lea.hbm %s1231_s5, %s690_s22  ;;  %p810_p8 = scmp.ne.s32.totalorder %s1164_s21, %s809_s13 }
  0x38   : > { %339 = vmatpush1.msra.mxu0 %v1066_v5  ;;  %v413_v17 = vld [vmem:[%s1230_s4] sm:$0xff]  ;;  %v415_v20 = vld [vmem:[%s1230_s4 + $0x10] sm:$0xff]  ;;  %v274_v21 = vld [vmem:[%s1227_s1 + $0x18] sm:$0xff]  ;;  %s913_s26 = smov [#allocation5]  }
  0x39   : > { %340 = vmatprep.subr.mxu0 %v1069_v6  ;;  %291 = vperm.xlu0 %779, %v277_v14   ;;  %v409_v50 = vld [vmem:[%s1229_s3] sm:$0xff]  ;;  %v410_v51 = vld [vmem:[%s1229_s3 + $0x8] sm:$0xff]  ;;  %v411_v52 = vld [vmem:[%s1229_s3 + $0x10] sm:$0xff]  ;;  %p811_p0 = pnand %p810_p8, %p1012_p9  ;;  %s813_s6 = sshll.u32 %s913_s26, 4  ;;  %s814_s6 = int_to_ptr.vmem [resolvable:$false] %s813_s6 }
  0x3a   : > { %341 = vmatpush1.msra.mxu0 %v1072_v7  ;;  %281 = vperm.xlu1 %780, %v275_v13   ;;  %v412_v53 = vld [vmem:[%s1229_s3 + $0x18] sm:$0xff]  ;;  %s815_s28 = scalar_lea.vmem %s814_s6, 2048  ;;  %p816_p4 = scmp.lt.s32.totalorder %s1164_s21, %s814_s6 }
  0x3b   : > { %342 = vmatprep.subr.mxu0 %v1075_v8  ;;  %p812_p1 = pneg %p811_p0  ;;  %p817_p5 = scmp.lt.s32.totalorder %s815_s28, %s809_s13 }
  0x3c   : > { %343 = vmatpush1.msra.mxu0 %v1084_v11 }
  0x3d   : > { %679 = vmatmul.mubr.msk.f32.vlgmr.msra.gmra.mxu0 %vm299_vm0, %v271_v12  ;;  %419 = vperm.xlu0 %779, %v413_v17   ;;  %p818_p6 = por %p817_p5, %p816_p4 }
  0x3e   : > { %382 = vmatprep.mubr.f32.mxu0 %v911_v0  ;;  %424 = vperm.xlu1 %780, %v414_v16  }
  0x3f   : > { %p819_p3 = pnand %p818_p6, %p812_p1 }
  0x41   : > { %680 = vmatmul.mubr.msk.f32.gmra.mxu0 %vm299_vm0, %v272_v15  ;;  %429 = vperm.xlu0 %779, %v415_v20  }
  0x42   : > { %388 = vmatprep.mubr.f32.mxu0 %v911_v0  ;;  %434 = vperm.xlu1 %780, %v416_v19  }
  0x45   : > { %681 = vmatmul.mubr.msk.f32.gmra.mxu0 %vm299_vm0, %v273_v18 }
  0x46   : > { %394 = vmatprep.mubr.f32.mxu0 %v911_v0 }
  0x49   : > { %682 = vmatmul.mubr.msk.f32.gmra.mxu0 %vm299_vm0, %v274_v21 }
  0xb0   : > { %v297_v26 = vpop.permute.xlu0 %296 }
  0xb1   : > { %v287_v29 = vpop.permute.xlu1 %286 }
  0xb4   : > { %v292_v31 = vpop.permute.xlu0 %291 }
  0xb5   : > { %v282_v37 = vpop.permute.xlu1 %281 }
  0xb8   : > { %v420_v54 = vpop.permute.xlu0 %419 }
  0xb9   : > { %v425_v60 = vpop.permute.xlu1 %424 }
  0xbc   : > { %v430_v12 = vpop.permute.xlu0 %429 }
  0xfd   : > { %v378_v22 = vpop.f32.mrf.mxu0 }
  0xfe   : > { %v379_v44 = vadd.f32 %v378_v22, %v282_v37 }
  0xff   : > { %v380_v23 = vpop.f32.mrf.mxu0 }
 0x100   : > { %v381_v42 = vadd.f32 %v380_v23, %v282_v37  ;;  %v401_v49 = vmax.f32 %v379_v44, 0.0 }
 0x101   : > { %v384_v24 = vpop.f32.mrf.mxu0 }
 0x102   : > { %v385_v40 = vadd.f32 %v384_v24, %v287_v29  ;;  %v402_v48 = vmax.f32 %v381_v42, 0.0 }
 0x103   : > { %v386_v25 = vpop.f32.mrf.mxu0 }
 0x104   : > { %v387_v38 = vadd.f32 %v386_v25, %v287_v29  ;;  %v403_v47 = vmax.f32 %v385_v40, 0.0 }
 0x105   : > { %v390_v27 = vpop.f32.mrf.mxu0 }
 0x106   : > { %v391_v36 = vadd.f32 %v390_v27, %v292_v31  ;;  %v404_v46 = vmax.f32 %v387_v38, 0.0 }
 0x107   : > { %v392_v28 = vpop.f32.mrf.mxu0 }
 0x108   : > { %v393_v34 = vadd.f32 %v392_v28, %v292_v31  ;;  %v405_v45 = vmax.f32 %v391_v36, 0.0 }
 0x109   : > { %v396_v30 = vpop.f32.mrf.mxu0 }
 0x10a   : > { %v397_v32 = vadd.f32 %v396_v30, %v297_v26  ;;  %v406_v43 = vmax.f32 %v393_v34, 0.0 }
 0x10b   : > { %v398_v33 = vpop.f32.mrf.mxu0 }
 0x10c   : > { %v399_v35 = vadd.f32 %v398_v33, %v297_v26  ;;  %v407_v41 = vmax.f32 %v397_v32, 0.0 }
 0x10e   : > { %v408_v39 = vmax.f32 %v399_v35, 0.0 }
 0x110   : > { %473 = vmatprep.subr.mxu1 %v408_v39 }
 0x111   : > { %474 = vmatpush1.msra.mxu1 %v407_v41 }
 0x112   : > { %475 = vmatprep.subr.mxu1 %v406_v43 }
 0x113   : > { %476 = vmatpush1.msra.mxu1 %v405_v45 }
 0x114   : > { %477 = vmatprep.subr.mxu1 %v404_v46 }
 0x115   : > { %478 = vmatpush1.msra.mxu1 %v403_v47 }
 0x116   : > { %479 = vmatprep.subr.mxu1 %v402_v48 }
 0x117   : > { %480 = vmatpush1.msra.mxu1 %v401_v49 }
 0x118   : > { %683 = vmatmul.mubr.msk.f32.vlgmr.msra.gmra.mxu1 %vm299_vm0, %v409_v50 }
 0x119   : > { %519 = vmatprep.mubr.f32.mxu1 %v911_v0 }
 0x11c   : > { %684 = vmatmul.mubr.msk.f32.gmra.mxu1 %vm299_vm0, %v410_v51 }
 0x11d   : > { %525 = vmatprep.mubr.f32.mxu1 %v911_v0 }
 0x120   : > { %685 = vmatmul.mubr.msk.f32.gmra.mxu1 %vm299_vm0, %v411_v52 }
 0x121   : > { %531 = vmatprep.mubr.f32.mxu1 %v911_v0 }
 0x124   : > { %686 = vmatmul.mubr.msk.f32.gmra.mxu1 %vm299_vm0, %v412_v53 }
 0x1d8   : > { %v515_v55 = vpop.f32.mrf.mxu1 }
 0x1d9   : > { %v516_v56 = vadd.f32 %v515_v55, %v420_v54 }
 0x1da   : > { %v517_v57 = vpop.f32.mrf.mxu1 }
 0x1db   : > { %v538_v58 = vadd.f32 %v516_v56, %v1084_v11  ;;  %v518_v59 = vadd.f32 %v517_v57, %v420_v54 }
 0x1dc   : > { %v521_v61 = vpop.f32.mrf.mxu1 }
 0x1dd   : > { %v546_v62 = vmax.f32 %v538_v58, 0.0  ;;  %v539_v63 = vadd.f32 %v518_v59, %v1075_v8  ;;  %v522_v0 = vadd.f32 %v521_v61, %v425_v60 }
 0x1de   : > { %v523_v1 = vpop.f32.mrf.mxu1 }
 0x1df   : > { %554 = vst [vmem:[%s1149_s11] sm:$0xff] %v546_v62  ;;  %v547_v9 = vmax.f32 %v539_v63, 0.0  ;;  %v540_v10 = vadd.f32 %v522_v0, %v1072_v7  ;;  %v524_v11 = vadd.f32 %v523_v1, %v425_v60  ;;  %v435_v7 = vpop.permute.xlu1 %434 }
 0x1e0   : > { %v527_v13 = vpop.f32.mrf.mxu1 }
 0x1e1   : > { %555 = vst [vmem:[%s1149_s11 + $0x8] sm:$0xff] %v547_v9  ;;  %v548_v14 = vmax.f32 %v540_v10, 0.0  ;;  %v541_v8 = vadd.f32 %v524_v11, %v1069_v6  ;;  %v528_v15 = vadd.f32 %v527_v13, %v430_v12 }
 0x1e2   : > { %v529_v16 = vpop.f32.mrf.mxu1 }
 0x1e3   : > { %556 = vst [vmem:[%s1149_s11 + $0x10] sm:$0xff] %v548_v14  ;;  %v549_v17 = vmax.f32 %v541_v8, 0.0  ;;  %v542_v18 = vadd.f32 %v528_v15, %v1066_v5  ;;  %v530_v19 = vadd.f32 %v529_v16, %v430_v12 }
 0x1e4   : > { %v533_v20 = vpop.f32.mrf.mxu1 }
 0x1e5   : > { %557 = vst [vmem:[%s1149_s11 + $0x18] sm:$0xff] %v549_v17  ;;  %v550_v21 = vmax.f32 %v542_v18, 0.0  ;;  %v543_v6 = vadd.f32 %v530_v19, %v1063_v4  ;;  %v534_v22 = vadd.f32 %v533_v20, %v435_v7 }
 0x1e6   : > { %v535_v23 = vpop.f32.mrf.mxu1 }
 0x1e7   : > { %558 = vst [vmem:[%s1149_s11 + $0x20] sm:$0xff] %v550_v21  ;;  %v551_v24 = vmax.f32 %v543_v6, 0.0  ;;  %v544_v5 = vadd.f32 %v534_v22, %v1061_v3  ;;  %v536_v25 = vadd.f32 %v535_v23, %v435_v7 }
 0x1e9   : > { %559 = vst [vmem:[%s1149_s11 + $0x28] sm:$0xff] %v551_v24  ;;  %v552_v26 = vmax.f32 %v544_v5, 0.0  ;;  %v545_v4 = vadd.f32 %v536_v25, %v1059_v2 }
 0x1eb   : > { %560 = vst [vmem:[%s1149_s11 + $0x30] sm:$0xff] %v552_v26  ;;  %v553_v27 = vmax.f32 %v545_v4, 0.0 }
 0x1ed   : > { %561 = vst [vmem:[%s1149_s11 + $0x38] sm:$0xff] %v553_v27 }
 0x1ee   : > { %822 = shalt.err (!%p819_p3)
}
 0x1ef   : > { %s823_s8 = scalar_lea.hbm %s1171_s16, 1024  ;;  %s827_s11 = scalar_lea.hbm %s1231_s5, 8192 }
 0x1f0   : > { %p824_p7 = scmp.ne.s32.totalorder %s1171_s16, %s823_s8  ;;  %p828_p13 = scmp.lt.s32.totalorder %s1171_s16, %s1231_s5 }
 0x1f1   : > { %p829_p2 = scmp.lt.s32.totalorder %s827_s11, %s823_s8 }
 0x1f2   : > { %p825_p10 = pnand %p824_p7, %p1012_p9 }
 0x1f3   : > { %p830_p8 = por %p829_p2, %p828_p13 }
 0x1f4   : > { %p826_p11 = pneg %p825_p10 }
 0x1f6   : > { %p831_p0 = pnand %p830_p8, %p826_p11 }
 0x1f8   : > { %834 = shalt.err (!%p831_p0)
}
 0x1f9   : > { %s914_s15 = smov 256   ;;  %s915_s22 = smov 1024  }
 0x1fa   : > { %s916_s18 = smov 16  }
 0x1fb   : > { %695 = dma.vmem_to_hbm [thread:$0]  (%p1012_p9), %s1164_s21, 1024, %s1171_s16, %s563_s29, %s914_s15, %s915_s22, %s916_s18  }
 0x1fc PF: > { %s1245_s7 = sld [smem:[#allocation8_spill]]  ;;  %p706_p1 = scmp.ge.s32.totalorder %s905_s25, 2 }
 0x1fe   : > { %p702_p4 = pnand %p706_p1, %p1018_p12 }
 0x200   : > { %p703_p5 = pneg %p702_p4 }
 0x202   : > { %s593_s13 = sand.u32 1, %s1245_s7  }
 0x203   : > { %s594_s26 = scalar_lea.sflag [#allocation4], %s593_s13 }
 0x204   : > { %872 = dma.done.wait (%p703_p5), %s594_s26, 1024  }
 0x205   : > { %874 = vsyncadd (%p703_p5), %s594_s26, 4294966272  ;;  %s21_s25 = sadd.s32 1, %s905_s25   ;;  %s1246_s22 = sld [smem:[#allocation9_spill]] }
 0x206   : > { %p18_p6 = scmp.ge.s32.totalorder %s21_s25, 10   ;;  %s1247_s9 = sld [smem:[#allocation10_spill]] }
 0x207   : > { %s1248_s24 = sld [smem:[#allocation11_spill]]  ;;  %s1249_s18 = smov %s881_s19 }
 0x208   : > { %s1250_s19 = smov %s885_s20  ;;  %s1251_s20 = smov %s1025_s14 }
 0x209   : > { %s1252_s21 = smov %s897_s23  ;;  %20 = sbr.rel (!%p18_p6) target bundleno = 7 (0x7), region = 85 }
 0x20c   : > { %s1253_s23 = smov %s1247_s9 }
 0x20e   :  { %599 = vsyncpa [#allocation3], 1 }
 0x20f   :  { %601 = vsyncpa [#allocation3 + $0x1], 1 }
 0x210   :  { %602 = vsyncpa [#allocation4], 1 }
 0x211   :  { %604 = vsyncpa [#allocation4 + $0x1], 1 }

</bundles_post_ra>
